<compile_context>
chip_gen: v7x
topology: tpu7x:2x2x1
jax: 0.10.0
libtpu: 0.0.40
codegen_flags: <defaults>
</compile_context>

<pallas_src>
import functools

import jax
import jax.numpy as jnp
from jax.experimental import pallas as pl
from jax.experimental.pallas import tpu as pltpu


_SMALL_BYTES = 1 << 20   # below this total f32 footprint, use the no-grid path
_TM_MAX = 512


def _round_up(x, m):
    return ((x + m - 1) // m) * m


def _vmem_capacity_bytes():
    """Per-TensorCore VMEM capacity; conservative v7x fallback (64 MiB)."""
    try:
        info = pltpu.get_tpu_info()
        return int(getattr(info, "vmem_capacity_bytes", 64 << 20))
    except Exception:
        return 64 << 20


def _sigmoid(z):
    """Exact, numerically stable sigmoid (single exp, no approx reciprocal)."""
    e = jnp.exp(-jnp.abs(z))
    return jnp.where(z >= 0, 1.0 / (1.0 + e), e / (1.0 + e))


# --------------------------- small-shape path (no grid) ----------------------

def _logreg_single_block_kernel(x_ref, wt_ref, b_ref, o_ref):
    z = jnp.dot(x_ref[...], wt_ref[...], preferred_element_type=jnp.float32)
    z = z + b_ref[...]
    o_ref[...] = _sigmoid(z).astype(o_ref.dtype)


# ----------------------------- tiled production path -------------------------

def _logreg_tiled_kernel(x_ref, wt_ref, b_ref, o_ref, *, compute_dtype):
    """One (tm, tn) output tile; K-reduction runs over grid axis 2.

    Accumulates directly into the resident f32 output tile (no scratch)."""
    k = pl.program_id(2)

    @pl.when(k == 0)
    def _init():
        o_ref[...] = jnp.zeros_like(o_ref)

    # x tile cast to the MXU compute dtype in VMEM (no extra HBM traffic);
    # the weight tile is already stored in compute_dtype (prepared once).
    o_ref[...] += jnp.dot(
        x_ref[...].astype(compute_dtype),
        wt_ref[...],
        preferred_element_type=jnp.float32,
    )

    @pl.when(k == pl.num_programs(2) - 1)
    def _finalize():
        o_ref[...] = _sigmoid(o_ref[...] + b_ref[...])


def make_logistic_regression(w, b, *, compute_dtype=jnp.bfloat16,
                             tm=None, tn=None, tk=None):
    """Prepare parameters once and return a jitted forward(x) -> sigmoid(x@w.T+b).

    w: (O, D) float32 (PyTorch nn.Linear layout), b: (O,) float32.
    """
    O, D = w.shape
    in_bytes = jnp.dtype(compute_dtype).itemsize
    cap = _vmem_capacity_bytes()

    # ---- tile sizes (lane-dense, minimal padding, VMEM-budget aware) ----
    if tn is None:
        Op = _round_up(O, 128)
        if Op <= 512:
            tn_ = Op                     # single j tile: x streamed once
        elif Op % 256 == 0:
            tn_ = 256
        else:
            tn_ = 128
    else:
        tn_ = tn
        Op = _round_up(O, tn_)

    Dp0 = _round_up(D, 128)
    if tk is None:
        budget = int(0.40 * cap)         # double-buffered working-set budget
        fixed = 2 * _TM_MAX * tn_ * 4 + 2 * tn_ * 4        # out (f32) + bias
        per_tk = 2 * _TM_MAX * 4 + 2 * tn_ * in_bytes      # x (f32) + w strips
        tk_ = max(128, min(4096, ((budget - fixed) // per_tk) // 128 * 128, Dp0))
    else:
        tk_ = tk
    Dp = _round_up(D, tk_)

    # ---- one-time parameter preparation (outside the per-call hot path) ----
    wt_f32 = jnp.asarray(w, jnp.float32).T                     # (D, O)
    wt_pad = jnp.pad(wt_f32, ((0, Dp - D), (0, Op - O))).astype(compute_dtype)
    b_pad = jnp.pad(jnp.asarray(b, jnp.float32), (0, Op - O)).reshape(1, Op)

    keep_small = (D * O * 4) <= _SMALL_BYTES
    wt_small = wt_f32 if keep_small else None
    b_small = jnp.asarray(b, jnp.float32).reshape(1, O) if keep_small else None

    tiled_kernel = functools.partial(_logreg_tiled_kernel,
                                     compute_dtype=compute_dtype)

    @jax.jit
    def forward(x):
        B, D_in = x.shape
        if D_in != D:
            raise ValueError(f"expected input dim {D}, got {D_in}")

        # ---------------- tiny-problem fast path: one block, no pad ----------
        if wt_small is not None and (B * D + D * O + B * O) * 4 <= _SMALL_BYTES:
            return pl.pallas_call(
                _logreg_single_block_kernel,
                out_shape=jax.ShapeDtypeStruct((B, O), jnp.float32),
            )(x.astype(jnp.float32), wt_small, b_small)

        # ---------------------------- tiled path -----------------------------
        if tm is not None:
            tm_ = tm
        elif B <= 128:
            tm_ = _round_up(B, 8)                       # single i tile
        else:
            # >=2 parallel i blocks (v7x megacore), capped at 512 rows.
            tm_ = min(_TM_MAX, _round_up((B + 1) // 2, 8))
        Bp = _round_up(B, tm_)

        xp = x
        if Bp != B or Dp != D:
            xp = jnp.pad(x, ((0, Bp - B), (0, Dp - D)))

        grid = (Bp // tm_, Op // tn_, Dp // tk_)

        # Actual double-buffered working set (x tile budgeted as f32).
        working = (2 * tm_ * tk_ * 4 + 2 * tk_ * tn_ * in_bytes
                   + 2 * tn_ * 4 + 2 * tm_ * tn_ * 4)
        vmem_limit = int(min(max(working + (16 << 20), 32 << 20),
                             int(0.75 * cap)))

        out_padded = pl.pallas_call(
            tiled_kernel,
            out_shape=jax.ShapeDtypeStruct((Bp, Op), jnp.float32),
            grid_spec=pltpu.PrefetchScalarGridSpec(
                num_scalar_prefetch=0,
                grid=grid,
                in_specs=[
                    pl.BlockSpec((tm_, tk_), lambda i, j, k: (i, k)),  # x
                    pl.BlockSpec((tk_, tn_), lambda i, j, k: (k, j)),  # w.T
                    pl.BlockSpec((1, tn_), lambda i, j, k: (0, j)),    # bias
                ],
                out_specs=pl.BlockSpec((tm_, tn_), lambda i, j, k: (i, j)),
            ),
            compiler_params=pltpu.CompilerParams(
                dimension_semantics=("parallel", "parallel", "arbitrary"),
                vmem_limit_bytes=vmem_limit,
            ),
        )(xp, wt_pad, b_pad)

        return out_padded[:B, :O]

    return forward


if __name__ == "__main__":
    # Tiny shapes consistent with the module: batch=8, input_dim=32, output_dim=4.
    batch, input_dim, output_dim = 8, 32, 4

    key = jax.random.PRNGKey(0)
    kx, kw, kb = jax.random.split(key, 3)
    x = jax.random.normal(kx, (batch, input_dim), dtype=jnp.float32)

    # nn.Linear-style uniform(-1/sqrt(D), 1/sqrt(D)) init.
    bound = 1.0 / jnp.sqrt(jnp.float32(input_dim))
    w = jax.random.uniform(kw, (output_dim, input_dim), dtype=jnp.float32,
                           minval=-bound, maxval=bound)
    b = jax.random.uniform(kb, (output_dim,), dtype=jnp.float32,
                           minval=-bound, maxval=bound)

    fwd = make_logistic_regression(w, b)
    out = jax.block_until_ready(fwd(x))
    ref = jax.nn.sigmoid(x @ w.T + b)
    assert out.shape == (batch, output_dim)
    assert jnp.allclose(out, ref, atol=1e-2, rtol=1e-2), "small-path mismatch"

    # Also exercise the tiled production path (tiles forced small so the
    # K-accumulation grid actually loops: grid = (4, 1, 4)).
    B2, D2, O2 = 1024, 512, 16
    k2x, k2w, k2b = jax.random.split(jax.random.PRNGKey(1), 3)
    x2 = jax.random.normal(k2x, (B2, D2), dtype=jnp.float32)
    bound2 = 1.0 / jnp.sqrt(jnp.float32(D2))
    w2 = jax.random.uniform(k2w, (O2, D2), dtype=jnp.float32,
                            minval=-bound2, maxval=bound2)
    b2 = jax.random.uniform(k2b, (O2,), dtype=jnp.float32,
                            minval=-bound2, maxval=bound2)
    fwd2 = make_logistic_regression(w2, b2, tm=256, tn=128, tk=128)
    out2 = jax.block_until_ready(fwd2(x2))
    ref2 = jax.nn.sigmoid(x2 @ w2.T + b2)
    assert out2.shape == (B2, O2)
    assert jnp.allclose(out2, ref2, atol=2e-2, rtol=2e-2), "tiled-path mismatch"

    print("KERNEL_OK")
</pallas_src>

<mosaic_0001>
module attributes {stable_mosaic.version = 11 : i64} {
  func.func @_logreg_single_block_kernel(%arg0: memref<8x32xf32, #tpu.memory_space<vmem>>, %arg1: memref<32x4xf32, #tpu.memory_space<vmem>>, %arg2: memref<1x4xf32, #tpu.memory_space<vmem>>, %arg3: memref<8x4xf32, #tpu.memory_space<vmem>>) attributes {dimension_semantics = [], scalar_prefetch = 0 : i64, scratch_operands = 0 : i64, tpu.core_type = #tpu.core_type<tc>} {
    %c0 = arith.constant 0 : index
    %c0_0 = arith.constant 0 : index
    %0 = vector.load %arg0[%c0, %c0_0] : memref<8x32xf32, #tpu.memory_space<vmem>>, vector<8x32xf32>
    %c0_1 = arith.constant 0 : index
    %c0_2 = arith.constant 0 : index
    %1 = vector.load %arg1[%c0_1, %c0_2] : memref<32x4xf32, #tpu.memory_space<vmem>>, vector<32x4xf32>
    %cst = arith.constant dense<0.000000e+00> : vector<8x4xf32>
    %2 = tpu.matmul %0, %1, %cst {dimension_numbers = #tpu.dot_dimension_numbers<[1], [0], [0], [1], [0, 0, 1, 1], [], []>} : vector<8x32xf32>, vector<32x4xf32>, vector<8x4xf32> -> vector<8x4xf32>
    %c0_3 = arith.constant 0 : index
    %c0_4 = arith.constant 0 : index
    %3 = vector.load %arg2[%c0_3, %c0_4] : memref<1x4xf32, #tpu.memory_space<vmem>>, vector<1x4xf32>
    %4 = vector.broadcast %3 : vector<1x4xf32> to vector<8x4xf32>
    %5 = arith.addf %2, %4 : vector<8x4xf32>
    %6 = math.absf %5 : vector<8x4xf32>
    %cst_5 = arith.constant 0.000000e+00 : f32
    %7 = vector.broadcast %cst_5 : f32 to vector<8x4xf32>
    %8 = arith.subf %7, %6 : vector<8x4xf32>
    %9 = math.exp %8 : vector<8x4xf32>
    %cst_6 = arith.constant 0.000000e+00 : f32
    %10 = vector.broadcast %cst_6 : f32 to vector<8x4xf32>
    %11 = arith.cmpf oge, %5, %10 : vector<8x4xf32>
    %cst_7 = arith.constant 1.000000e+00 : f32
    %12 = vector.broadcast %cst_7 : f32 to vector<8x4xf32>
    %13 = arith.addf %12, %9 : vector<8x4xf32>
    %cst_8 = arith.constant 1.000000e+00 : f32
    %14 = vector.broadcast %cst_8 : f32 to vector<8x4xf32>
    %15 = arith.divf %14, %13 : vector<8x4xf32>
    %cst_9 = arith.constant 1.000000e+00 : f32
    %16 = vector.broadcast %cst_9 : f32 to vector<8x4xf32>
    %17 = arith.addf %16, %9 : vector<8x4xf32>
    %18 = arith.divf %9, %17 : vector<8x4xf32>
    %19 = arith.select %11, %15, %18 : vector<8x4xi1>, vector<8x4xf32>
    %c0_10 = arith.constant 0 : index
    %c0_11 = arith.constant 0 : index
    %20 = vector.load %arg3[%c0_10, %c0_11] : memref<8x4xf32, #tpu.memory_space<vmem>>, vector<8x4xf32>
    tpu.vector_store %arg3[%c0_10, %c0_11], %19 {strides = array<i32>} : memref<8x4xf32, #tpu.memory_space<vmem>>, vector<8x4xf32>,
    return
  }
}

</mosaic_0001>

<bundles_post_ra>
// kernel: forward.1
= control target key start
LH: loop header
LB: loop body
LE: loop exit
PB: predicated region body
PF: predicated region fallthrough
CT: control target
= control target key end

     0   :  { %8 = vsyncpa [#allocation3], 0  ;;  %s291_s0 = inlined_call_operand.hbm [shape: f32[8,32], index: 0, kind: input, shape index: {}]   ;;  %s292_s1 = inlined_call_operand.hbm [shape: f32[32,4], index: 1, kind: input, shape index: {}]   ;;  %s293_s2 = inlined_call_operand.vmem [shape: f32[1,4], index: 2, kind: input, shape index: {}]   ;;  %s294_s3 = inlined_call_operand.vmem [shape: f32[8,4], index: 3, kind: output, shape index: {}]  }
   0x1   :  { %9 = vsyncpa [#allocation5], 0  ;;  %s227_s12 = smov [#allocation2]   ;;  %s228_s14 = smov [#allocation4]  }
   0x2   :  { %s16_s13 = sshll.u32 %s227_s12, 4  ;;  %s25_s15 = sshll.u32 %s228_s14, 4  ;;  %s17_s13 = int_to_ptr.vmem [resolvable:$true] %s16_s13  ;;  %s254_s15 = int_to_ptr.vmem [resolvable:$true] %s25_s15 }
   0x3   :  { %s179_s18 = scalar_lea.hbm %s291_s0, 128 }
   0x4   :  { %p180_p0 = scmp.ne.s32.totalorder %s291_s0, %s179_s18  ;;  %p183_p1 = scmp.lt.u32.totalorder %s179_s18, %s291_s0 }
   0x6   :  { %p185_p2 = pnand %p183_p1, %p180_p0 }
   0x8   :  { %188 = shalt.err (!%p185_p2)
}
   0x9   :  { %s189_s23 = scalar_lea.vmem %s17_s13, 128  ;;  %p194_p4 = scmp.lt.s32.totalorder %s17_s13, %s17_s13 }
   0xa   :  { %p190_p3 = scmp.ne.s32.totalorder %s17_s13, %s189_s23  ;;  %p195_p5 = scmp.lt.s32.totalorder %s189_s23, %s189_s23 }
   0xc   :  { %p196_p6 = por %p195_p5, %p194_p4 }
   0xe   :  { %p197_p7 = pnand %p196_p6, %p190_p3 }
  0x10   :  { %200 = shalt.err (!%p197_p7)
}
  0x11   :  { %19 = dma.hbm_to_vmem [thread:$0]  %s291_s0, 128, %s17_s13, [#allocation3]  }
  0x12   :  { %s201_s28 = scalar_lea.hbm %s292_s1, 512 }
  0x13   :  { %p202_p8 = scmp.ne.s32.totalorder %s292_s1, %s201_s28  ;;  %p205_p9 = scmp.lt.u32.totalorder %s201_s28, %s292_s1 }
  0x15   :  { %p207_p10 = pnand %p205_p9, %p202_p8 }
  0x17   :  { %210 = shalt.err (!%p207_p10)
}
  0x18   :  { %s211_s6 = scalar_lea.vmem %s254_s15, 512  ;;  %p216_p12 = scmp.lt.s32.totalorder %s254_s15, %s254_s15 }
  0x19   :  { %p212_p11 = scmp.ne.s32.totalorder %s254_s15, %s211_s6  ;;  %p217_p13 = scmp.lt.s32.totalorder %s211_s6, %s211_s6 }
  0x1b   :  { %p218_p0 = por %p217_p13, %p216_p12 }
  0x1d   :  { %p219_p1 = pnand %p218_p0, %p212_p11 }
  0x1f   :  { %222 = shalt.err (!%p219_p1)
}
  0x20   :  { %s229_s0 = smov 128   ;;  %s230_s7 = smov 8  }
  0x21   :  { %31 = dma.hbm_to_vmem [thread:$0]  %s292_s1, 512, %s254_s15, [#allocation5], %s229_s0, %s229_s0, %s230_s7  }
  0x22   :  { %223 = dma.done.wait [#allocation3], 128  }
  0x23   :  { %224 = vsyncadd [#allocation3], 4294967168 }
  0x24   :  { %225 = dma.done.wait [#allocation5], 512  }
  0x25   :  { %226 = vsyncadd [#allocation5], 4294966784  ;;  %v231_v0 = vmov 0.0|0.0   ;;  %vm232_vm0 = vmmov 0   ;;  %v233_v1 = vmov 0.0   ;;  %v41_v2 = vld [vmem:[#allocation4] sm:$0xff] }
  0x26   :  { %162 = vmatprep.subr.bf16.mxu0 %v231_v0  ;;  %159 = vmatprep.mubr.msk.f32.mxu0 %vm232_vm0, %v233_v1  ;;  %v42_v3 = vld [vmem:[#allocation4 + $0x8] sm:$0xff]  ;;  %v43_v4 = vld [vmem:[#allocation4 + $0x10] sm:$0xff]  ;;  %v44_v6 = vld [vmem:[#allocation4 + $0x18] sm:$0xff]  ;;  %vm52_vm1 = vcmask 261120   ;;  %vm136_vm2 = vcmask 31744  }
  0x27   :  { %v163_v5 = vpack.c.bf16 %v42_v3, %v41_v2  ;;  %v166_v7 = vpack.c.bf16 %v44_v6, %v43_v4  ;;  %v40_v8 = vld [vmem:[#allocation2] sm:$0xff]  ;;  %v144_v9 = vld [vmem:[%s293_s2] ss:$0 sm:$0xff] }
  0x29   :  { %164 = vmatpush3.bf16.msra.mxu0 %v163_v5 }
  0x2a   :  { %165 = vmatprep.subr.bf16.mxu0 %v231_v0 }
  0x2d   :  { %167 = vmatpush3.bf16.msra.mxu0 %v166_v7 }
  0x30   :  { %160 = vmatmul.mubr.msk.f32.vlgmr.msra.gmra.mrb[0].mxu0 %vm52_vm1, %v40_v8 }
 0x103   :  { %v122_v10 = vpop.f32.mrb[0].mxu0 }
 0x104   :  { %v123_v11 = vadd.f32 %v144_v9, %v122_v10  ;;  %v161_v12 = vpop.f32.mrb[1].mxu0 }
 0x106   :  { %v126_v13 = vand.u32 2147483647, %v123_v11  ;;  %vm130_vm3 = vcmp.ge.f32.partialorder %v123_v11, 0.0 }
 0x108   :  { %v127_v14 = vsub.f32 0.0, %v126_v13 }
 0x10a   :  { %v128_v15 = vmul.f32 1.442695, %v127_v14 }
 0x10c   :  { %175 = vpow2.f32 %v128_v15 }
 0x116   :  { %v176_v16 = vpop.eup %175 }
 0x117   :  { %v131_v17 = vadd.f32 1.0, %v176_v16 }
 0x119   :  { %177 = vrcp.f32 %v131_v17 }
 0x123   :  { %v178_v18 = vpop.eup %177 }
 0x124   :  { %v134_v19 = vmul.f32 %v178_v18, %v176_v16 }
 0x126   :  { %v135_v20 = vsel %vm130_vm3, %v178_v18, %v134_v19 }
 0x127   :  { %137 = vst.msk [vmem:[%s294_s3] sm:$0xff] %vm136_vm2, %v135_v20 }
 0x128   :  { %142 = vsyncpa [#allocation3], 1 }
 0x129   :  { %143 = vsyncpa [#allocation5], 1 }

</bundles_post_ra>
